<compile_context>
chip_gen: v6e
topology: v6e:2x2x1
jax: 0.10.0
libtpu: 0.0.40
codegen_flags: <defaults>
</compile_context>

<pallas_src>
import jax
import jax.numpy as jnp
from jax.experimental import pallas as pl
from jax.experimental.pallas import tpu as pltpu


def _cdiv(a, b):
    return -(-a // b)


def _budgets():
    """(per-tile x byte budget, vmem_limit_bytes) chosen per TPU generation."""
    try:
        kind = jax.devices()[0].device_kind.lower()
    except Exception:
        kind = ""
    if "v7" in kind or "7x" in kind:          # 64 MiB VMEM, ~3.2 TB/s HBM
        return 8 * 1024 * 1024, 48 * 1024 * 1024
    if "v6" in kind:                          # 128 MiB VMEM, ~1.4 TB/s HBM
        return 4 * 1024 * 1024, 64 * 1024 * 1024
    if "v5 lite" in kind or "v5e" in kind:    # ~0.8 TB/s HBM: 2 MiB tiles suffice
        return 2 * 1024 * 1024, 32 * 1024 * 1024
    return 4 * 1024 * 1024, 48 * 1024 * 1024  # unknown / v4 / v5p default


def _blk(dim, unit, target):
    """Block size for one axis: a multiple of `unit` (or the full dim), sized near
    `target` with balanced cdiv splitting so padded edge blocks stay small."""
    dim = int(dim)
    if dim <= unit:
        return max(dim, 1)
    target = max(unit, int(target))
    g = _cdiv(dim, unit)
    nblk = _cdiv(g, max(1, target // unit))
    b = unit * _cdiv(g, nblk)
    return min(b, dim)                        # min() keeps unit-multiple or full dim


def _fq_kernel(flag_ref, p_ref, x_ref, o_ref):
    """Elementwise fake-quant on one tile.

    x/o tile: (r_blk, c_blk) [channel on lanes] or (p_blk, c_blk, f_blk) [channel on
    sublanes].  p_ref holds the packed per-channel params [inv_s, s, lo, hi] with a
    trailing layout that broadcasts against the x tile.  flag_ref is a (1,) SMEM
    scalar: nonzero -> identity (the `min(scale) == 0` guard of the module).
    """
    x = x_ref[...]
    xf = x.astype(jnp.float32)
    prm = p_ref[...]                          # tiny: (4, c_blk) or (4, c_blk, 1)
    inv_s = prm[0:1]                          # per-channel 1/scale (precomputed)
    s = prm[1:2]                              # per-channel scale
    lo = prm[2:3]                             # Qn - zero_point
    hi = prm[3:4]                             # Qp - zero_point
    q = jnp.clip(jnp.round(xf * inv_s), lo, hi)
    fq = (q * s).astype(o_ref.dtype)
    o_ref[...] = jnp.where(flag_ref[0] != 0, x, fq)


def quantizer_forward(x, scale, zero_point, *, bit=8, c_axis=1, symmetric=True):
    """JAX/Pallas equivalent of Quantizer.forward (fake quantize-dequantize)."""
    if bit == 0:                              # static module config -> identity
        return x

    ndim = x.ndim
    c_axis = c_axis % ndim
    C = int(x.shape[c_axis])
    pre = 1
    for d in x.shape[:c_axis]:
        pre *= int(d)
    post = 1
    for d in x.shape[c_axis + 1:]:
        post *= int(d)

    if symmetric:
        qmin, qmax = float(-(2 ** (bit - 1))), float(2 ** (bit - 1) - 1)
    else:
        qmin, qmax = 0.0, float(2 ** bit - 1)

    # --- per-channel params packed into one (4, C) f32 array: inv_s, s, lo, hi ---
    s_c = jnp.broadcast_to(jnp.asarray(scale, jnp.float32).reshape(-1), (C,))
    zp_c = jnp.broadcast_to(jnp.asarray(zero_point, jnp.float32).reshape(-1), (C,))
    inv_c = jnp.where(s_c == 0.0, 0.0, 1.0 / s_c)        # safe reciprocal, computed once
    params = jnp.stack([inv_c, s_c, qmin - zp_c, qmax - zp_c], axis=0)

    # Identity flag mirroring `torch.min(self.scale) == 0`, resolved in-kernel:
    # no device->host sync, no retrace axis, valid for traced scale under jax.jit.
    flag = (jnp.min(s_c) == 0.0).astype(jnp.int32).reshape(1)

    itemsize = jnp.dtype(x.dtype).itemsize
    sub_unit = max(8, 32 // max(1, itemsize))            # f32:8, bf16:16, int8/fp8:32
    tile_bytes, vmem_limit = _budgets()
    budget = max(8 * 128, tile_bytes // itemsize)        # x elements per tile

    flag_spec = pl.BlockSpec(memory_space=pltpu.MemorySpace.SMEM)
    cost = pl.CostEstimate(flops=6 * int(x.size), transcendentals=0,
                           bytes_accessed=2 * int(x.size) * itemsize + 16 * C + 4)

    if post == 1:
        # -- channel is the (effective) last axis: put channels on LANES --
        x2d = x.reshape(pre, C)
        c_blk = _blk(C, 128, max(128, budget // max(1, min(pre, 256))))
        r_blk = _blk(pre, sub_unit, max(sub_unit, budget // c_blk))
        grid = (_cdiv(pre, r_blk), _cdiv(C, c_blk))
        out = pl.pallas_call(
            _fq_kernel,
            out_shape=jax.ShapeDtypeStruct(x2d.shape, x.dtype),
            grid=grid,
            in_specs=[
                flag_spec,
                pl.BlockSpec((4, c_blk), lambda r, c: (0, c)),
                pl.BlockSpec((r_blk, c_blk), lambda r, c: (r, c)),
            ],
            out_specs=pl.BlockSpec((r_blk, c_blk), lambda r, c: (r, c)),
            compiler_params=pltpu.CompilerParams(
                dimension_semantics=("parallel", "parallel"),
                vmem_limit_bytes=vmem_limit),
            cost_estimate=cost,
        )(flag, params, x2d)
        return out.reshape(x.shape)

    # -- general case: (pre, C, post); channel on SUBLANES, post on LANES, pre folded --
    x3d = x.reshape(pre, C, post)
    params3 = params.reshape(4, C, 1)
    f_blk = _blk(post, 128, max(128, budget // max(1, min(pre * C, 256))))
    c_blk = _blk(C, sub_unit, max(sub_unit, budget // f_blk))
    p_blk = _blk(pre, 1, max(1, budget // (c_blk * f_blk)))
    grid = (_cdiv(pre, p_blk), _cdiv(C, c_blk), _cdiv(post, f_blk))
    out = pl.pallas_call(
        _fq_kernel,
        out_shape=jax.ShapeDtypeStruct(x3d.shape, x.dtype),
        grid=grid,
        in_specs=[
            flag_spec,
            pl.BlockSpec((4, c_blk, 1), lambda p, c, f: (0, c, 0)),
            pl.BlockSpec((p_blk, c_blk, f_blk), lambda p, c, f: (p, c, f)),
        ],
        out_specs=pl.BlockSpec((p_blk, c_blk, f_blk), lambda p, c, f: (p, c, f)),
        compiler_params=pltpu.CompilerParams(
            dimension_semantics=("parallel", "parallel", "parallel"),
            vmem_limit_bytes=vmem_limit),
        cost_estimate=cost,
    )(flag, params3, x3d)
    return out.reshape(x.shape)


def _reference(x, scale, zero_point, *, bit=8, c_axis=1, symmetric=True):
    """Pure-JAX reference of the PyTorch fake-quant forward (uses true division)."""
    if bit == 0 or float(jnp.min(jnp.asarray(scale, jnp.float32))) == 0.0:
        return x
    if symmetric:
        qmin, qmax = -(2 ** (bit - 1)), 2 ** (bit - 1) - 1
    else:
        qmin, qmax = 0, 2 ** bit - 1
    dst_shape = [1] * x.ndim
    dst_shape[c_axis] = -1
    C = x.shape[c_axis]
    s = jnp.broadcast_to(jnp.asarray(scale, jnp.float32).reshape(-1), (C,)).reshape(dst_shape)
    zp = jnp.broadcast_to(jnp.asarray(zero_point, jnp.float32).reshape(-1), (C,)).reshape(dst_shape)
    x_q = jnp.clip(jnp.round(x.astype(jnp.float32) / s) + zp, qmin, qmax)
    return ((x_q - zp) * s).astype(x.dtype)


def _check_fakequant(out, ref, scale, name):
    out_f = out.astype(jnp.float32)
    ref_f = ref.astype(jnp.float32)
    err = jnp.abs(out_f - ref_f)
    lsb = float(jnp.max(jnp.abs(scale)))
    # Exact except (at most) rare round-to-nearest boundary flips from computing
    # round(x * (1/s)) instead of round(x / s); those differ by one LSB.
    assert float(jnp.max(err)) <= lsb + 1e-6, (name, float(jnp.max(err)), lsb)
    frac_exact = float(jnp.mean((err <= 1e-5).astype(jnp.float32)))
    assert frac_exact > 0.99, (name, frac_exact)


if __name__ == "__main__":
    key = jax.random.PRNGKey(0)
    N, C, H, W = 2, 4, 16, 16
    bit = 8

    x = jax.random.normal(key, (N, C, H, W), dtype=jnp.float32)

    # Deterministic "observer" result (observer.update + _calc_Qscope equivalent):
    # per-channel symmetric minmax scale, zero_point = 0.
    abs_max = jnp.max(jnp.abs(x), axis=(0, 2, 3))              # (C,)
    scale = abs_max / float(2 ** (bit - 1) - 1)
    zero_point = jnp.zeros((C,), dtype=jnp.float32)

    out = jax.block_until_ready(
        quantizer_forward(x, scale, zero_point, bit=bit, c_axis=1, symmetric=True))
    ref = _reference(x, scale, zero_point, bit=bit, c_axis=1, symmetric=True)
    assert out.shape == x.shape and out.dtype == x.dtype
    _check_fakequant(out, ref, scale, "symmetric per-channel NCHW")

    # asymmetric (nonzero zero_point, folded into clip bounds in-kernel)
    x_min = jnp.min(x, axis=(0, 2, 3))
    x_max = jnp.max(x, axis=(0, 2, 3))
    scale_a = (x_max - x_min) / float(2 ** bit - 1)
    zp_a = jnp.clip(jnp.round(-x_min / scale_a), 0.0, float(2 ** bit - 1))
    out_a = jax.block_until_ready(
        quantizer_forward(x, scale_a, zp_a, bit=bit, c_axis=1, symmetric=False))
    ref_a = _reference(x, scale_a, zp_a, bit=bit, c_axis=1, symmetric=False)
    _check_fakequant(out_a, ref_a, scale_a, "asymmetric per-channel NCHW")

    # c_axis = 0 (per-output-channel weight quant), 2-D weight
    w = jax.random.normal(jax.random.PRNGKey(1), (4, 256), dtype=jnp.float32)
    w_scale = jnp.max(jnp.abs(w), axis=1) / float(2 ** (bit - 1) - 1)
    w_zp = jnp.zeros((4,), dtype=jnp.float32)
    out_w = jax.block_until_ready(
        quantizer_forward(w, w_scale, w_zp, bit=bit, c_axis=0, symmetric=True))
    ref_w = _reference(w, w_scale, w_zp, bit=bit, c_axis=0, symmetric=True)
    _check_fakequant(out_w, ref_w, w_scale, "symmetric per-channel weight")

    # c_axis == last axis (channels-on-lanes fast path), e.g. (batch, seq, hidden)
    xl = jax.random.normal(jax.random.PRNGKey(2), (2, 8, 32), dtype=jnp.float32)
    l_scale = jnp.max(jnp.abs(xl), axis=(0, 1)) / float(2 ** (bit - 1) - 1)
    l_zp = jnp.zeros((32,), dtype=jnp.float32)
    out_l = jax.block_until_ready(
        quantizer_forward(xl, l_scale, l_zp, bit=bit, c_axis=2, symmetric=True))
    ref_l = _reference(xl, l_scale, l_zp, bit=bit, c_axis=2, symmetric=True)
    _check_fakequant(out_l, ref_l, l_scale, "symmetric per-channel last-axis")

    # bit == 0 -> identity (static Python branch)
    out0 = quantizer_forward(x, scale, zero_point, bit=0, c_axis=1)
    assert jnp.array_equal(out0, x)

    # min(scale) == 0 -> identity (resolved in-kernel via the SMEM flag)
    out_s0 = jax.block_until_ready(
        quantizer_forward(x, scale.at[0].set(0.0), zero_point, bit=bit, c_axis=1))
    assert jnp.array_equal(out_s0, x)

    # TODO(synk): observer.update / _calc_Qscope (calibration statistics) are
    # training-time state updates outside forward() and are not implemented here.
    print("KERNEL_OK")
</pallas_src>

<mosaic_0001>
module attributes {stable_mosaic.version = 11 : i64} {
  func.func @_fq_kernel(%arg0: i32, %arg1: i32, %arg2: i32, %arg3: memref<1xi32, #tpu.memory_space<smem>>, %arg4: memref<4x4x1xf32, #tpu.memory_space<vmem>>, %arg5: memref<2x4x256xf32, #tpu.memory_space<vmem>>, %arg6: memref<2x4x256xf32, #tpu.memory_space<vmem>>) attributes {dimension_semantics = [#tpu.dimension_semantics<parallel>, #tpu.dimension_semantics<parallel>, #tpu.dimension_semantics<parallel>], iteration_bounds = array<i64: 1, 1, 1>, scalar_prefetch = 0 : i64, scratch_operands = 0 : i64, tpu.core_type = #tpu.core_type<tc>, window_params = [{transform_indices = @transform_0, window_bounds = array<i64: 1>}, {transform_indices = @transform_1, window_bounds = array<i64: 4, 4, 1>}, {transform_indices = @transform_2, window_bounds = array<i64: 2, 4, 256>}, {transform_indices = @transform_3, window_bounds = array<i64: 2, 4, 256>}]} {
    %c0 = arith.constant 0 : index
    %c0_0 = arith.constant 0 : index
    %c0_1 = arith.constant 0 : index
    %0 = vector.load %arg5[%c0, %c0_0, %c0_1] : memref<2x4x256xf32, #tpu.memory_space<vmem>>, vector<2x4x256xf32>
    %c0_2 = arith.constant 0 : index
    %c0_3 = arith.constant 0 : index
    %c0_4 = arith.constant 0 : index
    %1 = vector.load %arg4[%c0_2, %c0_3, %c0_4] : memref<4x4x1xf32, #tpu.memory_space<vmem>>, vector<4x4x1xf32>
    %2 = vector.extract_strided_slice %1 {offsets = [0, 0, 0], sizes = [1, 4, 1], strides = [1, 1, 1]} : vector<4x4x1xf32> to vector<1x4x1xf32>
    %3 = vector.extract_strided_slice %1 {offsets = [1, 0, 0], sizes = [1, 4, 1], strides = [1, 1, 1]} : vector<4x4x1xf32> to vector<1x4x1xf32>
    %4 = vector.extract_strided_slice %1 {offsets = [2, 0, 0], sizes = [1, 4, 1], strides = [1, 1, 1]} : vector<4x4x1xf32> to vector<1x4x1xf32>
    %5 = vector.extract_strided_slice %1 {offsets = [3, 0, 0], sizes = [1, 4, 1], strides = [1, 1, 1]} : vector<4x4x1xf32> to vector<1x4x1xf32>
    %6 = vector.broadcast %2 : vector<1x4x1xf32> to vector<2x4x256xf32>
    %7 = arith.mulf %0, %6 : vector<2x4x256xf32>
    %8 = math.roundeven %7 : vector<2x4x256xf32>
    %9 = vector.broadcast %4 : vector<1x4x1xf32> to vector<2x4x256xf32>
    %10 = arith.maximumf %9, %8 : vector<2x4x256xf32>
    %11 = vector.broadcast %5 : vector<1x4x1xf32> to vector<2x4x256xf32>
    %12 = arith.minimumf %11, %10 : vector<2x4x256xf32>
    %13 = vector.broadcast %3 : vector<1x4x1xf32> to vector<2x4x256xf32>
    %14 = arith.mulf %12, %13 : vector<2x4x256xf32>
    %c0_5 = arith.constant 0 : index
    %15 = memref.load %arg3[%c0_5] : memref<1xi32, #tpu.memory_space<smem>>
    %c0_i32 = arith.constant 0 : i32
    %16 = arith.cmpi ne, %15, %c0_i32 : i32
    %17 = arith.select %16, %0, %14 : vector<2x4x256xf32>
    %c0_6 = arith.constant 0 : index
    %c0_7 = arith.constant 0 : index
    %c0_8 = arith.constant 0 : index
    %18 = vector.load %arg6[%c0_6, %c0_7, %c0_8] : memref<2x4x256xf32, #tpu.memory_space<vmem>>, vector<2x4x256xf32>
    tpu.vector_store %arg6[%c0_6, %c0_7, %c0_8], %17 {strides = array<i32>} : memref<2x4x256xf32, #tpu.memory_space<vmem>>, vector<2x4x256xf32>,
    return
  }
  func.func @transform_0(%arg0: i32, %arg1: i32, %arg2: i32) -> i32 {
    %c0_i32 = arith.constant 0 : i32
    %c0_i32_0 = arith.constant 0 : i32
    return %c0_i32 : i32
  }
  func.func @transform_1(%arg0: i32, %arg1: i32, %arg2: i32) -> (i32, i32, i32) {
    %c0_i32 = arith.constant 0 : i32
    %c0_i32_0 = arith.constant 0 : i32
    %c0_i32_1 = arith.constant 0 : i32
    return %c0_i32, %arg1, %c0_i32_0 : i32, i32, i32
  }
  func.func @transform_2(%arg0: i32, %arg1: i32, %arg2: i32) -> (i32, i32, i32) {
    %c0_i32 = arith.constant 0 : i32
    return %arg0, %arg1, %arg2 : i32, i32, i32
  }
  func.func @transform_3(%arg0: i32, %arg1: i32, %arg2: i32) -> (i32, i32, i32) {
    %c0_i32 = arith.constant 0 : i32
    return %arg0, %arg1, %arg2 : i32, i32, i32
  }
}

</mosaic_0001>

<bundles_post_ra>
// kernel: tpu_custom_call.1
= control target key start
LH: loop header
LB: loop body
LE: loop exit
PB: predicated region body
PF: predicated region fallthrough
CT: control target
= control target key end

     0   :  { %v149_v1 = vmov 0   ;;  %s198_s0 = inlined_call_operand.<no memory space> [shape: s32[1], index: 0, kind: input, shape index: {}]   ;;  %s199_s1 = inlined_call_operand.vmem [shape: f32[4,4,1], index: 1, kind: input, shape index: {}]   ;;  %s200_s2 = inlined_call_operand.vmem [shape: f32[2,4,256], index: 2, kind: input, shape index: {}]   ;;  %s201_s3 = inlined_call_operand.hbm [shape: f32[2,4,256], index: 3, kind: output, shape index: {}]  }
   0x1   :  { %v18_v0 = vld [vmem:[%s199_s1] sm:$0xf]  ;;  %125 = vset.pattern.permute.xlu0 %v149_v1  ;;  %126 = vset.pattern.permute.xlu1 %v149_v1  ;;  %v21_v2 = vld [vmem:[%s199_s1 + $0xc] sm:$0xf] }
   0x2   :  { %24 = vperm.xlu0 %125, %v18_v0   ;;  %55 = vperm.xlu1 %126, %v21_v2  }
   0x3   :  { %9 = vsyncpa [#allocation4], 0  ;;  %v20_v3 = vld [vmem:[%s199_s1 + $0x8] sm:$0xf]  ;;  %v19_v4 = vld [vmem:[%s199_s1 + $0x4] sm:$0xf]  ;;  %v29_v7 = vlaneseq }
   0x4   :  { %v150_v5 = vmov 839922192   ;;  %v16_v12 = vld [vmem:[%s200_s2] sm:$0xff]  ;;  %v17_v13 = vld [vmem:[%s200_s2 + $0x8] sm:$0xff]  ;;  %p72_p0 = scmp.ne.s32.totalorder %s198_s0, 0  ;;  %s151_s0 = smov [#allocation3]  }
   0x5   :  { %v27_v6 = vunpack.c.l.s4 %v150_v5  ;;  %v30_v9 = vshrl.u32 %v29_v7, 7  ;;  %s93_s25 = sshll.u32 %s151_s0, 4  ;;  %s94_s25 = int_to_ptr.vmem [resolvable:$true] %s93_s25 }
   0x6   :  { %40 = vperm.xlu0 %125, %v20_v3   ;;  %64 = vperm.xlu1 %126, %v19_v4   ;;  %s73_s2 = scalar_select %p72_p0, 1, 0 }
   0x7   :  { %v28_v8 = vunpack.c.0.s8 %v27_v6  ;;  %s127_s26 = scalar_lea.vmem %s94_s25, 256  ;;  %p132_p2 = scmp.lt.s32.totalorder %s94_s25, %s94_s25 }
   0x8   :  { %v74_v43 = vstv %s73_s2  ;;  %p128_p1 = scmp.ne.s32.totalorder %s94_s25, %s127_s26  ;;  %p133_p3 = scmp.lt.s32.totalorder %s127_s26, %s127_s26 }
   0x9   :  { %v31_v10 = vsub.s32 %v28_v8, %v30_v9  ;;  %vm75_vm2 = vcmp.eq.s32.totalorder %v74_v43, 1 }
   0xa   :  { %p134_p4 = por %p133_p3, %p132_p2 }
   0xc   :  { %p135_p5 = pnand %p134_p4, %p128_p1 }
  0x7d   :  { %v25_v11 = vpop.permute.xlu0 %24  ;;  %v56_v32 = vpop.permute.xlu1 %55 }
  0x7e   :  { %v32_v14 = vrot.slane %v25_v11, %v31_v10 }
  0x80   :  { %v34_v15 = vmul.f32 %v32_v14, %v16_v12  ;;  %v35_v16 = vmul.f32 %v32_v14, %v17_v13 }
  0x81   :  { %v41_v29 = vpop.permute.xlu0 %40  ;;  %v65_v44 = vpop.permute.xlu1 %64 }
  0x82   :  { %v106_v17 = vcvt.f32.s32 %v34_v15  ;;  %v114_v18 = vcvt.f32.s32 %v35_v16  ;;  %v104_v21 = vand.u32 2147483647, %v34_v15  ;;  %v112_v22 = vand.u32 2147483647, %v35_v16 }
  0x83   :  { %v109_v23 = vand.u32 2147483648, %v34_v15  ;;  %v117_v24 = vand.u32 2147483648, %v35_v16 }
  0x84   :  { %v107_v19 = vcvt.s32.f32 %v106_v17  ;;  %v115_v20 = vcvt.s32.f32 %v114_v18  ;;  %vm105_vm0 = vcmp.lt.f32.partialorder %v104_v21, 8388608.0  ;;  %vm113_vm1 = vcmp.lt.f32.partialorder %v112_v22, 8388608.0 }
  0x86   :  { %v108_v25 = vand.u32 2147483647, %v107_v19  ;;  %v116_v26 = vand.u32 2147483647, %v115_v20 }
  0x88   :  { %v110_v27 = vor.u32 %v109_v23, %v108_v25  ;;  %v118_v28 = vor.u32 %v117_v24, %v116_v26 }
  0x8a   :  { %v111_v30 = vsel %vm105_vm0, %v110_v27, %v34_v15  ;;  %v119_v31 = vsel %vm113_vm1, %v118_v28, %v35_v16 }
  0x8b   :  { %v45_v33 = vcombine.high %v111_v30, %v111_v30  ;;  %v46_v34 = vcombine.high %v119_v31, %v119_v31  ;;  %v49_v35 = vmax.f32 %v41_v29, %v111_v30  ;;  %v51_v36 = vmax.f32 %v41_v29, %v119_v31 }
  0x8d   :  { %v50_v37 = vmax.f32 %v41_v29, %v45_v33  ;;  %v52_v38 = vmax.f32 %v41_v29, %v46_v34  ;;  %v58_v39 = vmin.f32 %v56_v32, %v49_v35  ;;  %v60_v40 = vmin.f32 %v56_v32, %v51_v36 }
  0x8f   :  { %v59_v41 = vmin.f32 %v56_v32, %v50_v37  ;;  %v61_v42 = vmin.f32 %v56_v32, %v52_v38  ;;  %v67_v45 = vmul.f32 %v65_v44, %v58_v39  ;;  %v69_v47 = vmul.f32 %v65_v44, %v60_v40 }
  0x91   :  { %v68_v46 = vmul.f32 %v65_v44, %v59_v41  ;;  %v70_v48 = vmul.f32 %v65_v44, %v61_v42 }
  0x93   :  { %v80_v49 = vcombine.low %v67_v45, %v68_v46  ;;  %v81_v50 = vcombine.low %v69_v47, %v70_v48 }
  0x95   :  { %v84_v51 = vsel %vm75_vm2, %v16_v12, %v80_v49  ;;  %v85_v52 = vsel %vm75_vm2, %v17_v13, %v81_v50 }
  0x96   :  { %86 = vst [vmem:[#allocation3] sm:$0xff] %v84_v51  ;;  %87 = vst [vmem:[#allocation3 + $0x8] sm:$0xff] %v85_v52 }
  0x97   :  { %138 = shalt.err (!%p135_p5)
}
  0x98   :  { %s152_s27 = smov 128   ;;  %s153_s28 = smov 8  }
  0x99   :  { %99 = dma.vmem_to_hbm [thread:$0]  %s94_s25, 256, %s201_s3, [#allocation4], %s152_s27, %s152_s27, %s153_s28  }
  0x9a   :  { %147 = dma.done.wait [#allocation4], 256  }
  0x9b   :  { %148 = vsyncadd [#allocation4], 4294967040 }
  0x9c   :  { %103 = vsyncpa [#allocation4], 1 }

</bundles_post_ra>
